<compile_context>
chip_gen: v7x
topology: tpu7x:2x2x1
jax: 0.10.0
libtpu: 0.0.40
codegen_flags: <defaults>
</compile_context>

<pallas_src>
import jax
import jax.numpy as jnp
import numpy as np
from jax.experimental import pallas as pl
from jax.experimental.pallas import tpu as pltpu

HIDDEN = 128
NUM_OF_BITRATE = 4                            # candidate_bitrate has 4 entries
A_DIM = NUM_OF_BITRATE + 2 * NUM_OF_BITRATE   # 12, as used by choose_action
HEAD_PAD = 128                                # lane-dense fused head width


def net_kernel(x_ref, w1_ref, b1_ref, wh_ref, bh_ref, out_ref):
    # pi1 = tanh(x @ W1 + b1): MXU matmul + EUP tanh.
    h = jnp.tanh(
        jnp.dot(x_ref[...], w1_ref[...], preferred_element_type=jnp.float32)
        + b1_ref[...]
    )
    # Single fused head matmul producing [logits | value | zero-pad] as one
    # lane-dense (multiple-of-128) slab -> unmasked vst, one output DMA.
    out_ref[...] = (
        jnp.dot(h, wh_ref[...], preferred_element_type=jnp.float32) + bh_ref[...]
    )


def _pick_batch_tile(b_pad):
    """Largest multiple-of-8 tile <= 512 that divides the (padded) batch."""
    tb = min(b_pad, 512)
    while b_pad % tb != 0:
        tb -= 8
    return tb


def net_forward(x, w1, b1, w2, b2, wv, bv, *, batch_tile=None):
    """Returns (logits [B, a_dim], values [B, 1]) — same semantics as Net.forward."""
    B, s_dim = x.shape
    a_dim = w2.shape[1]
    assert a_dim + 1 <= HEAD_PAD

    # --- Head fusion: concat W2 || Wv and b2 || bv, zero-pad to 128 lanes. ---
    wh = jnp.zeros((HIDDEN, HEAD_PAD), jnp.float32)
    wh = wh.at[:, :a_dim].set(w2).at[:, a_dim:a_dim + 1].set(wv)
    bh = jnp.zeros((1, HEAD_PAD), jnp.float32)
    bh = bh.at[:, :a_dim].set(b2).at[:, a_dim:a_dim + 1].set(bv)

    # --- Batch tiling: pad B up to a multiple-of-8 tile, grid over batch. ---
    if batch_tile is None:
        b_pad = ((B + 7) // 8) * 8
        tb = _pick_batch_tile(b_pad)
    else:
        tb = int(batch_tile)
        assert tb % 8 == 0, "batch_tile must be a multiple of 8"
        b_pad = ((B + tb - 1) // tb) * tb
    if b_pad != B:
        x = jnp.pad(x, ((0, b_pad - B), (0, 0)))
    grid = (b_pad // tb,)

    out = pl.pallas_call(
        net_kernel,
        out_shape=jax.ShapeDtypeStruct((b_pad, HEAD_PAD), jnp.float32),
        grid_spec=pltpu.PrefetchScalarGridSpec(
            num_scalar_prefetch=0,
            grid=grid,
            in_specs=[
                pl.BlockSpec((tb, s_dim), lambda i: (i, 0)),        # x tile
                pl.BlockSpec((s_dim, HIDDEN), lambda i: (0, 0)),    # W1 (resident)
                pl.BlockSpec((1, HIDDEN), lambda i: (0, 0)),        # b1 (resident)
                pl.BlockSpec((HIDDEN, HEAD_PAD), lambda i: (0, 0)),  # fused head W
                pl.BlockSpec((1, HEAD_PAD), lambda i: (0, 0)),      # fused head b
            ],
            out_specs=pl.BlockSpec((tb, HEAD_PAD), lambda i: (i, 0)),
        ),
        compiler_params=pltpu.CompilerParams(
            dimension_semantics=("parallel",),   # batch axis -> both TCs on v7x
        ),
    )(x, w1, b1, wh, bh)

    # Slice off batch padding and the zero-padded head columns BEFORE any
    # downstream softmax (padded columns carry bias-only garbage).
    logits = out[:B, :a_dim]
    values = out[:B, a_dim:a_dim + 1]
    return logits, values


def init_params(key, s_dim, a_dim):
    """Deterministic kaiming-normal-style init (fan_in mode), biases zero."""
    k1, k2, k3 = jax.random.split(key, 3)
    w1 = jax.random.normal(k1, (s_dim, HIDDEN), jnp.float32) * jnp.sqrt(2.0 / s_dim)
    b1 = jnp.zeros((1, HIDDEN), jnp.float32)
    w2 = jax.random.normal(k2, (HIDDEN, a_dim), jnp.float32) * jnp.sqrt(2.0 / HIDDEN)
    b2 = jnp.zeros((1, a_dim), jnp.float32)
    wv = jax.random.normal(k3, (HIDDEN, 1), jnp.float32) * jnp.sqrt(2.0 / HIDDEN)
    bv = jnp.zeros((1, 1), jnp.float32)
    return w1, b1, w2, b2, wv, bv


if __name__ == "__main__":
    # TODO(synk): choose_action / loss_func (Categorical sampling, log-prob loss)
    # are host-side training utilities, not part of the module's forward pass.
    key = jax.random.PRNGKey(0)
    k_x, k_p = jax.random.split(key)

    B, S_DIM = 128, 16          # batched states; batch_tile=64 -> grid of 2 steps
    x = jax.random.normal(k_x, (B, S_DIM), jnp.float32)
    w1, b1, w2, b2, wv, bv = init_params(k_p, S_DIM, A_DIM)

    logits, values = net_forward(x, w1, b1, w2, b2, wv, bv, batch_tile=64)
    logits, values = jax.block_until_ready((logits, values))

    # Reference check in plain JAX (unfused).
    h_ref = jnp.tanh(x @ w1 + b1)
    logits_ref = h_ref @ w2 + b2
    values_ref = h_ref @ wv + bv
    np.testing.assert_allclose(np.asarray(logits), np.asarray(logits_ref),
                               rtol=1e-5, atol=1e-5)
    np.testing.assert_allclose(np.asarray(values), np.asarray(values_ref),
                               rtol=1e-5, atol=1e-5)
    assert logits.shape == (B, A_DIM) and values.shape == (B, 1)

    # Also exercise the ragged / tiny-batch path (padding to multiple of 8).
    x_small = x[:5]
    ls, vs = jax.block_until_ready(net_forward(x_small, w1, b1, w2, b2, wv, bv))
    np.testing.assert_allclose(np.asarray(ls), np.asarray(logits_ref[:5]),
                               rtol=1e-5, atol=1e-5)
    np.testing.assert_allclose(np.asarray(vs), np.asarray(values_ref[:5]),
                               rtol=1e-5, atol=1e-5)

    print("KERNEL_OK")
</pallas_src>

<mosaic_0001>
module attributes {stable_mosaic.version = 11 : i64} {
  func.func @net_kernel(%arg0: i32, %arg1: memref<64x16xf32, #tpu.memory_space<vmem>>, %arg2: memref<16x128xf32, #tpu.memory_space<vmem>>, %arg3: memref<1x128xf32, #tpu.memory_space<vmem>>, %arg4: memref<128x128xf32, #tpu.memory_space<vmem>>, %arg5: memref<1x128xf32, #tpu.memory_space<vmem>>, %arg6: memref<64x128xf32, #tpu.memory_space<vmem>>) attributes {dimension_semantics = [#tpu.dimension_semantics<parallel>], iteration_bounds = array<i64: 2>, scalar_prefetch = 0 : i64, scratch_operands = 0 : i64, tpu.core_type = #tpu.core_type<tc>, window_params = [{transform_indices = @transform_0, window_bounds = array<i64: 64, 16>}, {pipeline_mode = #tpu.pipeline_mode<synchronous>, transform_indices = @transform_1, window_bounds = array<i64: 16, 128>}, {pipeline_mode = #tpu.pipeline_mode<synchronous>, transform_indices = @transform_2, window_bounds = array<i64: 1, 128>}, {pipeline_mode = #tpu.pipeline_mode<synchronous>, transform_indices = @transform_3, window_bounds = array<i64: 128, 128>}, {pipeline_mode = #tpu.pipeline_mode<synchronous>, transform_indices = @transform_4, window_bounds = array<i64: 1, 128>}, {transform_indices = @transform_5, window_bounds = array<i64: 64, 128>}]} {
    %c0 = arith.constant 0 : index
    %c0_0 = arith.constant 0 : index
    %0 = vector.load %arg1[%c0, %c0_0] : memref<64x16xf32, #tpu.memory_space<vmem>>, vector<64x16xf32>
    %c0_1 = arith.constant 0 : index
    %c0_2 = arith.constant 0 : index
    %1 = vector.load %arg2[%c0_1, %c0_2] : memref<16x128xf32, #tpu.memory_space<vmem>>, vector<16x128xf32>
    %cst = arith.constant dense<0.000000e+00> : vector<64x128xf32>
    %2 = tpu.matmul %0, %1, %cst {dimension_numbers = #tpu.dot_dimension_numbers<[1], [0], [0], [1], [0, 0, 1, 1], [], []>} : vector<64x16xf32>, vector<16x128xf32>, vector<64x128xf32> -> vector<64x128xf32>
    %c0_3 = arith.constant 0 : index
    %c0_4 = arith.constant 0 : index
    %3 = vector.load %arg3[%c0_3, %c0_4] : memref<1x128xf32, #tpu.memory_space<vmem>>, vector<1x128xf32>
    %4 = vector.broadcast %3 : vector<1x128xf32> to vector<64x128xf32>
    %5 = arith.addf %2, %4 : vector<64x128xf32>
    %6 = math.tanh %5 : vector<64x128xf32>
    %c0_5 = arith.constant 0 : index
    %c0_6 = arith.constant 0 : index
    %7 = vector.load %arg4[%c0_5, %c0_6] : memref<128x128xf32, #tpu.memory_space<vmem>>, vector<128x128xf32>
    %cst_7 = arith.constant dense<0.000000e+00> : vector<64x128xf32>
    %8 = tpu.matmul %6, %7, %cst_7 {dimension_numbers = #tpu.dot_dimension_numbers<[1], [0], [0], [1], [0, 0, 1, 1], [], []>} : vector<64x128xf32>, vector<128x128xf32>, vector<64x128xf32> -> vector<64x128xf32>
    %c0_8 = arith.constant 0 : index
    %c0_9 = arith.constant 0 : index
    %9 = vector.load %arg5[%c0_8, %c0_9] : memref<1x128xf32, #tpu.memory_space<vmem>>, vector<1x128xf32>
    %10 = vector.broadcast %9 : vector<1x128xf32> to vector<64x128xf32>
    %11 = arith.addf %8, %10 : vector<64x128xf32>
    %c0_10 = arith.constant 0 : index
    %c0_11 = arith.constant 0 : index
    %12 = vector.load %arg6[%c0_10, %c0_11] : memref<64x128xf32, #tpu.memory_space<vmem>>, vector<64x128xf32>
    tpu.vector_store %arg6[%c0_10, %c0_11], %11 {strides = array<i32>} : memref<64x128xf32, #tpu.memory_space<vmem>>, vector<64x128xf32>,
    return
  }
  func.func @transform_0(%arg0: i32) -> (i32, i32) {
    %c0_i32 = arith.constant 0 : i32
    %c0_i32_0 = arith.constant 0 : i32
    return %arg0, %c0_i32 : i32, i32
  }
  func.func @transform_1(%arg0: i32) -> (i32, i32) {
    %c0_i32 = arith.constant 0 : i32
    %c0_i32_0 = arith.constant 0 : i32
    %c0_i32_1 = arith.constant 0 : i32
    return %c0_i32, %c0_i32_0 : i32, i32
  }
  func.func @transform_2(%arg0: i32) -> (i32, i32) {
    %c0_i32 = arith.constant 0 : i32
    %c0_i32_0 = arith.constant 0 : i32
    %c0_i32_1 = arith.constant 0 : i32
    return %c0_i32, %c0_i32_0 : i32, i32
  }
  func.func @transform_3(%arg0: i32) -> (i32, i32) {
    %c0_i32 = arith.constant 0 : i32
    %c0_i32_0 = arith.constant 0 : i32
    %c0_i32_1 = arith.constant 0 : i32
    return %c0_i32, %c0_i32_0 : i32, i32
  }
  func.func @transform_4(%arg0: i32) -> (i32, i32) {
    %c0_i32 = arith.constant 0 : i32
    %c0_i32_0 = arith.constant 0 : i32
    %c0_i32_1 = arith.constant 0 : i32
    return %c0_i32, %c0_i32_0 : i32, i32
  }
  func.func @transform_5(%arg0: i32) -> (i32, i32) {
    %c0_i32 = arith.constant 0 : i32
    %c0_i32_0 = arith.constant 0 : i32
    return %arg0, %c0_i32 : i32, i32
  }
}

</mosaic_0001>

<bundles_post_ra>
// kernel: tpu_custom_call.1
= control target key start
LH: loop header
LB: loop body
LE: loop exit
PB: predicated region body
PF: predicated region fallthrough
CT: control target
= control target key end

     0   :  { %10 = vsyncpa [#allocation3], 0  ;;  %s1100_s0 = inlined_call_operand.vmem [shape: f32[128,16], index: 0, kind: input, shape index: {}]   ;;  %s1101_s1 = inlined_call_operand.vmem [shape: f32[16,128], index: 1, kind: input, shape index: {}]   ;;  %s1102_s2 = inlined_call_operand.vmem [shape: f32[1,128], index: 2, kind: input, shape index: {}]   ;;  %s1103_s3 = inlined_call_operand.vmem [shape: f32[128,128], index: 3, kind: input, shape index: {}]   ;;  %s1104_s4 = inlined_call_operand.vmem [shape: f32[1,128], index: 4, kind: input, shape index: {}]   ;;  %s1105_s5 = inlined_call_operand.hbm [shape: f32[128,128], index: 5, kind: output, shape index: {}]  }
   0x1   :  { %12 = vsyncpa [#allocation3 + $0x1], 0  ;;  %s916_s18 = smov 0   ;;  %s918_s19 = smov 0  }
   0x2   :  { %s920_s20 = smov 0   ;;  %s922_s21 = smov 0  }
   0x3 LB: > { %s937_s22 = sadd.s32 4294967295, %s881_s21   ;;  %s593_s23 = sadd.s32 4294967294, %s881_s21   ;;  %s881_s21 = sphi %s922_s21, %s1111_s21   ;;  %s877_s20 = sphi %s920_s20, %s1110_s20   ;;  %s873_s19 = sphi %s918_s19, %s1109_s19   ;;  %s869_s18 = sphi %s916_s18, %s1108_s18  }
   0x4   : > { %s941_s24 = sadd.s32 1, %s881_s21   ;;  %s135_s25 = sadd.s32 1, %s877_s20 }
   0x5   : > { %s132_s26 = ssub.s32 %s881_s21, %s941_s24  ;;  %p145_p0 = scmp.ne.s32.totalorder %s877_s20, %s873_s19 }
   0x6   : > { %p133_p1 = scmp.eq.s32.totalorder %s132_s26, 0  ;;  %p146_p2 = scmp.eq.s32.totalorder %s937_s22, 1 }
   0x7   : > { %p151_p3 = scmp.ne.s32.totalorder %s873_s19, %s869_s18  ;;  %p152_p4 = scmp.eq.s32.totalorder %s593_s23, 1 }
   0x8   : > { %s952_s27 = scalar_select %p133_p1, %s877_s20, %s135_s25  }
   0x9   : > { %p954_p5 = por %p146_p2, %p145_p0  ;;  %p958_p6 = por %p152_p4, %p151_p3 }
   0xa   : > { %p596_p7 = scmp.ge.s32.totalorder %s881_s21, 1  ;;  %p191_p8 = scmp.lt.s32.totalorder %s881_s21, 3 }
   0xc   : > { %p192_p9 = pnand %p596_p7, %p191_p8 }
   0xd   : > { %v234_v0 = vld [vmem:[%s1101_s1] sm:$0xff] (!%p192_p9)  ;;  %v235_v1 = vld [vmem:[%s1101_s1 + $0x8] sm:$0xff] (!%p192_p9)  ;;  %s598_s9 = sshll.u32 (!%p192_p9), %s937_s22, 3  ;;  %v383_v5 = vld [vmem:[%s1103_s3 + $0x10] sm:$0xff] (!%p192_p9)  ;;  %vm243_vm0 = vcmask (!%p192_p9), 130048   ;;  %s216_s16 = sand.u32 (!%p192_p9), 1, %s873_s19  }
   0xe   : > { %195 = sbr.rel (%p192_p9) target bundleno = 495 (0x1ef), region = 40  ;;  %v381_v2 = vld [vmem:[%s1103_s3] sm:$0xff] (!%p192_p9)  ;;  %v710_v3 = vpack.c.bf16 (!%p192_p9), %v235_v1, %v234_v0  ;;  %p220_p10 = scmp.lt.s32.totalorder (!%p192_p9), %s598_s9, 15  ;;  %v382_v4 = vld [vmem:[%s1103_s3 + $0x8] sm:$0xff] (!%p192_p9)  ;;  %v384_v6 = vld [vmem:[%s1103_s3 + $0x18] sm:$0xff] (!%p192_p9) }
   0xf   : > { %v714_v7 = vpack.c.bf16 (!%p192_p9), %v382_v4, %v381_v2  ;;  %v718_v8 = vpack.c.bf16 (!%p192_p9), %v384_v6, %v383_v5  ;;  %v385_v9 = vld [vmem:[%s1103_s3 + $0x20] sm:$0xff] (!%p192_p9)  ;;  %v386_v10 = vld [vmem:[%s1103_s3 + $0x28] sm:$0xff] (!%p192_p9)  ;;  %v387_v16 = vld [vmem:[%s1103_s3 + $0x30] sm:$0xff] (!%p192_p9)  ;;  %s597_s17 = sshll.u32 (!%p192_p9), %s216_s16, 6  ;;  %s883_s11 = smov (!%p192_p9), [#allocation2]  }
  0x10   : > { %711 = vmatprep.subr.bf16.mxu0 (!%p192_p9), %v710_v3  ;;  %v722_v14 = vpack.c.bf16 (!%p192_p9), %v386_v10, %v385_v9  ;;  %v388_v17 = vld [vmem:[%s1103_s3 + $0x38] sm:$0xff] (!%p192_p9)  ;;  %v389_v23 = vld [vmem:[%s1103_s3 + $0x40] sm:$0xff] (!%p192_p9)  ;;  %v390_v24 = vld [vmem:[%s1103_s3 + $0x48] sm:$0xff] (!%p192_p9)  ;;  %s218_s26 = scalar_lea.vmem (!%p192_p9), [#allocation2], %s597_s17  ;;  %s823_s12 = sshll.u32 (!%p192_p9), %s883_s11, 4  ;;  %s824_s12 = int_to_ptr.vmem [resolvable:$false] %s823_s12 }
  0x11   : > { %713 = vmatpush3.bf16.msra.mxu0 (!%p192_p9), %v710_v3  ;;  %746 = vmatprep.subr.bf16.mxu1 (!%p192_p9), %v714_v7  ;;  %v726_v19 = vpack.c.bf16 (!%p192_p9), %v388_v17, %v387_v16  ;;  %v730_v25 = vpack.c.bf16 (!%p192_p9), %v390_v24, %v389_v23  ;;  %v391_v26 = vld [vmem:[%s1103_s3 + $0x50] sm:$0xff] (!%p192_p9)  ;;  %v392_v27 = vld [vmem:[%s1103_s3 + $0x58] sm:$0xff] (!%p192_p9)  ;;  %v393_v29 = vld [vmem:[%s1103_s3 + $0x60] sm:$0xff] (!%p192_p9)  ;;  %s531_s6 = sshll.u32 (!%p192_p9), %s218_s26, 4  ;;  %s825_s13 = scalar_lea.vmem (!%p192_p9), %s824_s12, 2048  ;;  %s1055_s6 = int_to_ptr.vmem [resolvable:$true] %s531_s6 }
  0x12   : > { %715 = vmatprep.subr.bf16.mxu0 (!%p192_p9), %v714_v7  ;;  %754 = vmatpush3.bf16.msra.mxu1 (!%p192_p9), %v714_v7  ;;  %v734_v28 = vpack.c.bf16 (!%p192_p9), %v392_v27, %v391_v26  ;;  %v394_v30 = vld [vmem:[%s1103_s3 + $0x68] sm:$0xff] (!%p192_p9)  ;;  %v395_v32 = vld [vmem:[%s1103_s3 + $0x70] sm:$0xff] (!%p192_p9)  ;;  %v396_v33 = vld [vmem:[%s1103_s3 + $0x78] sm:$0xff] (!%p192_p9)  ;;  %s819_s10 = scalar_lea.vmem (!%p192_p9), %s1055_s6, 1024  ;;  %p826_p0 = scmp.lt.s32.totalorder (!%p192_p9), %s1055_s6, %s824_s12 }
  0x13   : > { %747 = vmatprep.subr.bf16.mxu1 (!%p192_p9), %v718_v8  ;;  %v738_v31 = vpack.c.bf16 (!%p192_p9), %v394_v30, %v393_v29  ;;  %v742_v34 = vpack.c.bf16 (!%p192_p9), %v396_v33, %v395_v32  ;;  %v600_v35 = vld [vmem:[%s1102_s2] ss:$0 sm:$0xff] (!%p192_p9)  ;;  %p820_p11 = scmp.ne.s32.totalorder (!%p192_p9), %s1055_s6, %s819_s10  ;;  %p827_p1 = scmp.lt.s32.totalorder (!%p192_p9), %s825_s13, %s819_s10 }
  0x14   : > { %v609_v60 = vld [vmem:[%s1104_s4] ss:$0 sm:$0xff] (!%p192_p9) }
  0x15   : > { %s1113_s9 = smov (!%p220_p10, %s598_s9), 15  ;;  %p821_p12 = pnand %p820_p11, %p954_p5 }
  0x16   : > { %s599_s23 = sshll.u32 %s1113_s9, 3  ;;  %755 = vmatpush3.bf16.msra.mxu1 %v718_v8  ;;  %p828_p2 = por %p827_p1, %p826_p0 }
  0x17   : > { %s986_s30 = scalar_lea.vmem %s1100_s0, %s599_s23  ;;  %748 = vmatprep.subr.bf16.mxu1 %v722_v14  ;;  %p822_p13 = pneg %p821_p12 }
  0x18   : > { %v226_v11 = vld [vmem:[%s986_s30] sm:$0xff]  ;;  %v227_v12 = vld [vmem:[%s986_s30 + $0x8] sm:$0xff]  ;;  %v228_v13 = vld [vmem:[%s986_s30 + $0x10] sm:$0xff] }
  0x19   : > { %654 = vmatprep.mubr.msk.f32.mxu0 %vm243_vm0, %v226_v11  ;;  %v229_v15 = vld [vmem:[%s986_s30 + $0x18] sm:$0xff]  ;;  %v230_v18 = vld [vmem:[%s986_s30 + $0x20] sm:$0xff]  ;;  %v231_v20 = vld [vmem:[%s986_s30 + $0x28] sm:$0xff]  ;;  %p829_p3 = pnand %p828_p2, %p822_p13 }
  0x1a   : > { %655 = vmatmul.mubr.msk.f32.vlgmr.msra.gmra.mrb[0].mxu0 %vm243_vm0, %v227_v12  ;;  %756 = vmatpush3.bf16.msra.mxu1 %v722_v14  ;;  %v232_v21 = vld [vmem:[%s986_s30 + $0x30] sm:$0xff]  ;;  %v233_v22 = vld [vmem:[%s986_s30 + $0x38] sm:$0xff]  ;;  %s615_s30 = sshll.u32 %s937_s22, 10  ;;  %s1059_s22 = scalar_lea.sflag [#allocation3], %s216_s16 }
  0x1b   : > { %657 = vmatprep.mubr.msk.f32.mxu0 %vm243_vm0, %v228_v13  ;;  %717 = vmatpush3.bf16.msra.mxu0 %v714_v7  ;;  %s1053_s9 = scalar_lea.hbm %s1105_s5, %s615_s30 }
  0x1c   : > { %719 = vmatprep.subr.bf16.mxu0 %v718_v8  ;;  %749 = vmatprep.subr.bf16.mxu1 %v726_v19 }
  0x1e   : > { %658 = vmatmul.mubr.msk.f32.gmra.mrb[2].mxu0 %vm243_vm0, %v229_v15  ;;  %757 = vmatpush3.bf16.msra.mxu1 %v726_v19 }
  0x1f   : > { %660 = vmatprep.mubr.msk.f32.mxu0 %vm243_vm0, %v230_v18  ;;  %721 = vmatpush3.bf16.msra.mxu0 %v718_v8 }
  0x20   : > { %723 = vmatprep.subr.bf16.mxu0 %v722_v14  ;;  %750 = vmatprep.subr.bf16.mxu1 %v730_v25 }
  0x22   : > { %661 = vmatmul.mubr.msk.f32.gmra.mrb[4].mxu0 %vm243_vm0, %v231_v20  ;;  %758 = vmatpush3.bf16.msra.mxu1 %v730_v25 }
  0x23   : > { %663 = vmatprep.mubr.msk.f32.mxu0 %vm243_vm0, %v232_v21  ;;  %725 = vmatpush3.bf16.msra.mxu0 %v722_v14 }
  0x24   : > { %727 = vmatprep.subr.bf16.mxu0 %v726_v19  ;;  %751 = vmatprep.subr.bf16.mxu1 %v734_v28 }
  0x26   : > { %664 = vmatmul.mubr.msk.f32.gmra.mrb[6].mxu0 %vm243_vm0, %v233_v22  ;;  %759 = vmatpush3.bf16.msra.mxu1 %v734_v28 }
  0x27   : > { %729 = vmatpush3.bf16.msra.mxu0 %v726_v19  ;;  %752 = vmatprep.subr.bf16.mxu1 %v738_v31 }
  0x28   : > { %731 = vmatprep.subr.bf16.mxu0 %v730_v25 }
  0x2a   : > { %760 = vmatpush3.bf16.msra.mxu1 %v738_v31 }
  0x2b   : > { %733 = vmatpush3.bf16.msra.mxu0 %v730_v25  ;;  %753 = vmatprep.subr.bf16.mxu1 %v742_v34 }
  0x2c   : > { %735 = vmatprep.subr.bf16.mxu0 %v734_v28 }
  0x2e   : > { %761 = vmatpush3.bf16.msra.mxu1 %v742_v34 }
  0x2f   : > { %737 = vmatpush3.bf16.msra.mxu0 %v734_v28 }
  0x30   : > { %739 = vmatprep.subr.bf16.mxu0 %v738_v31 }
  0x33   : > { %741 = vmatpush3.bf16.msra.mxu0 %v738_v31 }
  0x34   : > { %743 = vmatprep.subr.bf16.mxu0 %v742_v34 }
  0x37   : > { %745 = vmatpush3.bf16.msra.mxu0 %v742_v34 }
  0xed   : > { %v656_v36 = vpop.f32.mrb[0].mxu0 }
  0xee   : > { %v340_v37 = vadd.f32 %v656_v36, %v600_v35  ;;  %v334_v38 = vpop.f32.mrb[1].mxu0 }
  0xef   : > { %v335_v39 = vadd.f32 %v600_v35, %v334_v38 }
  0xf1   : > { %803 = vtanh.f32 %v335_v39  ;;  %v659_v40 = vpop.f32.mrb[2].mxu0 }
  0xf2   : > { %805 = vtanh.f32 %v340_v37  ;;  %v350_v41 = vadd.f32 %v659_v40, %v600_v35  ;;  %v344_v42 = vpop.f32.mrb[3].mxu0 }
  0xf3   : > { %v345_v43 = vadd.f32 %v600_v35, %v344_v42 }
  0xf5   : > { %807 = vtanh.f32 %v345_v43  ;;  %v662_v44 = vpop.f32.mrb[4].mxu0 }
  0xf6   : > { %809 = vtanh.f32 %v350_v41  ;;  %v360_v45 = vadd.f32 %v662_v44, %v600_v35  ;;  %v354_v46 = vpop.f32.mrb[5].mxu0 }
  0xf7   : > { %v355_v47 = vadd.f32 %v600_v35, %v354_v46 }
  0xf9   : > { %811 = vtanh.f32 %v355_v47  ;;  %v665_v48 = vpop.f32.mrb[6].mxu0 }
  0xfa   : > { %813 = vtanh.f32 %v360_v45  ;;  %v370_v49 = vadd.f32 %v665_v48, %v600_v35  ;;  %v364_v50 = vpop.f32.mrb[7].mxu0 }
  0xfb   : > { %v804_v51 = vpop.eup %803  ;;  %v365_v52 = vadd.f32 %v600_v35, %v364_v50 }
  0xfc   : > { %v806_v53 = vpop.eup %805  ;;  %698 = vmatprep.mubr.f32.mxu0 %v804_v51 }
  0xfd   : > { %815 = vtanh.f32 %v365_v52  ;;  %699 = vmatmul.mubr.f32.vlgmr.msra.gmra.mrb[8].mxu0 %v806_v53 }
  0xfe   : > { %817 = vtanh.f32 %v370_v49 }
  0xff   : > { %v808_v54 = vpop.eup %807 }
 0x100   : > { %v810_v55 = vpop.eup %809  ;;  %701 = vmatprep.mubr.f32.mxu1 %v808_v54 }
 0x101   : > { %702 = vmatmul.mubr.f32.vlgmr.msra.gmra.mrb[0].mxu1 %v810_v55 }
 0x103   : > { %v812_v56 = vpop.eup %811 }
 0x104   : > { %v814_v57 = vpop.eup %813  ;;  %704 = vmatprep.mubr.f32.mxu1 %v812_v56 }
 0x105   : > { %705 = vmatmul.mubr.f32.gmra.mrb[2].mxu1 %v814_v57 }
 0x107   : > { %v816_v58 = vpop.eup %815 }
 0x108   : > { %v818_v59 = vpop.eup %817  ;;  %707 = vmatprep.mubr.f32.mxu1 %v816_v58 }
 0x109   : > { %708 = vmatmul.mubr.f32.gmra.mrb[4].mxu1 %v818_v59 }
 0x1d0   : > { %v700_v61 = vpop.f32.mrb[8].mxu0 }
 0x1d1   : > { %v476_v62 = vadd.f32 %v700_v61, %v609_v60  ;;  %v470_v63 = vpop.f32.mrb[9].mxu0 }
 0x1d2   : > { %v471_v0 = vadd.f32 %v609_v60, %v470_v63 }
 0x1d3   : > { %510 = vst [vmem:[%s218_s26 + $0x8] sm:$0xff] %v476_v62 }
 0x1d4   : > { %509 = vst [vmem:[%s218_s26] sm:$0xff] %v471_v0  ;;  %v703_v1 = vpop.f32.mrb[0].mxu1 }
 0x1d5   : > { %v486_v2 = vadd.f32 %v703_v1, %v609_v60  ;;  %v480_v3 = vpop.f32.mrb[1].mxu1 }
 0x1d6   : > { %v481_v4 = vadd.f32 %v609_v60, %v480_v3 }
 0x1d7   : > { %512 = vst [vmem:[%s218_s26 + $0x18] sm:$0xff] %v486_v2 }
 0x1d8   : > { %511 = vst [vmem:[%s218_s26 + $0x10] sm:$0xff] %v481_v4  ;;  %v706_v5 = vpop.f32.mrb[2].mxu1 }
 0x1d9   : > { %v496_v6 = vadd.f32 %v706_v5, %v609_v60  ;;  %v490_v7 = vpop.f32.mrb[3].mxu1 }
 0x1da   : > { %v491_v8 = vadd.f32 %v609_v60, %v490_v7 }
 0x1db   : > { %514 = vst [vmem:[%s218_s26 + $0x28] sm:$0xff] %v496_v6 }
 0x1dc   : > { %513 = vst [vmem:[%s218_s26 + $0x20] sm:$0xff] %v491_v8  ;;  %v709_v9 = vpop.f32.mrb[4].mxu1 }
 0x1dd   : > { %v506_v10 = vadd.f32 %v709_v9, %v609_v60  ;;  %v500_v11 = vpop.f32.mrb[5].mxu1 }
 0x1de   : > { %v501_v12 = vadd.f32 %v609_v60, %v500_v11 }
 0x1df   : > { %516 = vst [vmem:[%s218_s26 + $0x38] sm:$0xff] %v506_v10 }
 0x1e0   : > { %515 = vst [vmem:[%s218_s26 + $0x30] sm:$0xff] %v501_v12 }
 0x1e1   : > { %832 = shalt.err (!%p829_p3)
}
 0x1e2   : > { %s833_s14 = scalar_lea.hbm %s1053_s9, 1024  ;;  %s837_s17 = scalar_lea.hbm %s1105_s5, 2048 }
 0x1e3   : > { %p834_p4 = scmp.ne.s32.totalorder %s1053_s9, %s833_s14  ;;  %p838_p9 = scmp.lt.u32.totalorder %s1053_s9, %s1105_s5 }
 0x1e4   : > { %p839_p10 = scmp.lt.u32.totalorder %s837_s17, %s833_s14  ;;  %p841_p12 = scmp.lt.u32.totalorder %s833_s14, %s1053_s9 }
 0x1e5   : > { %p835_p7 = pnand %p834_p4, %p954_p5 }
 0x1e6   : > { %p840_p11 = por %p839_p10, %p838_p9 }
 0x1e7   : > { %p836_p8 = pneg %p835_p7 }
 0x1e8   : > { %p842_p13 = por %p841_p12, %p840_p11 }
 0x1ea   : > { %p843_p0 = pnand %p842_p13, %p836_p8 }
 0x1ec   : > { %846 = shalt.err (!%p843_p0)
}
 0x1ed   : > { %s884_s26 = smov 128   ;;  %s885_s30 = smov 8  }
 0x1ee   : > { %762 = dma.vmem_to_hbm [thread:$0]  (%p954_p5), %s1055_s6, 1024, %s1053_s9, %s1059_s22, %s884_s26, %s884_s26, %s885_s30  }
 0x1ef PF: > { %p768_p1 = scmp.ge.s32.totalorder %s881_s21, 2  ;;  %s546_s7 = sand.u32 1, %s869_s18  }
 0x1f0   : > { %s547_s8 = scalar_lea.sflag [#allocation3], %s546_s7 }
 0x1f1   : > { %p765_p2 = pnand %p768_p1, %p958_p6 }
 0x1f3   : > { %864 = dma.done.wait (!%p765_p2), %s547_s8, 1024  }
 0x1f4   : > { %866 = vsyncadd (!%p765_p2), %s547_s8, 4294966272  ;;  %p15_p3 = scmp.ge.s32.totalorder %s941_s24, 4   ;;  %s1108_s18 = smov %s873_s19 }
 0x1f5   : > { %s1109_s19 = smov %s877_s20  ;;  %s1110_s20 = smov %s952_s27 }
 0x1f6   : > { %s1111_s21 = smov %s941_s24  ;;  %17 = sbr.rel (!%p15_p3) target bundleno = 3 (0x3), region = 75 }
 0x1fd   :  { %552 = vsyncpa [#allocation3], 1 }
 0x1fe   :  { %554 = vsyncpa [#allocation3 + $0x1], 1 }

</bundles_post_ra>
